<compile_context>
chip_gen: v7x
topology: tpu7x:2x2x1
jax: 0.10.0
libtpu: 0.0.40
codegen_flags: <defaults>
</compile_context>

<pallas_src>
import jax
import jax.numpy as jnp
from jax.experimental import pallas as pl
from jax.experimental.pallas import tpu as pltpu


def attention_kernel(g_ref, x_ref, wg_ref, wx_ref, wp_ref, b_ref, bp_ref, o_ref):
    """One (channels, pixel-tile) block.

    g_ref : (F_g, TP)    gating features   (channels on sublanes, pixels on lanes)
    x_ref : (F_l, TP)    skip features
    wg_ref: (F_int, F_g) folded Conv1x1+BN weights of W_g
    wx_ref: (F_int, F_l) folded Conv1x1+BN weights of W_x
    wp_ref: (F_int, 1)   folded psi Conv1x1+BN weights
    b_ref : (F_int, 1)   combined folded bias (bg + bx)
    bp_ref: (1, 1)       folded psi bias
    o_ref : (F_l, TP)    x * sigmoid(psi)
    """
    F_g = g_ref.shape[0]
    F_l = x_ref.shape[0]

    g = g_ref[...].astype(jnp.float32)
    x = x_ref[...].astype(jnp.float32)
    wg = wg_ref[...]
    wx = wx_ref[...]

    # Fused 1x1 convs as unrolled VPU broadcast-MACs (outer-product form):
    #   s[d, p] = sum_c wg[d, c] * g[c, p] + sum_c wx[d, c] * x[c, p] + b[d]
    # Bias folded into the first MAC (one fewer (F_int, TP) add).
    s = wg[:, 0:1] * g[0:1, :] + b_ref[...]
    for c in range(1, F_g):
        s = s + wg[:, c:c + 1] * g[c:c + 1, :]
    for c in range(F_l):
        s = s + wx[:, c:c + 1] * x[c:c + 1, :]

    h = jnp.where(s > 0, s, 0.01 * s)                      # LeakyReLU(0.01)

    # psi conv (F_int -> 1): per-sublane scale + sublane reduction (XLU),
    # sigmoid on the EUP.
    psi_logit = jnp.sum(h * wp_ref[...], axis=0, keepdims=True) + bp_ref[...]
    psi = jax.nn.sigmoid(psi_logit)                        # (1, TP)

    o_ref[...] = (x * psi).astype(o_ref.dtype)             # broadcast over F_l


def _fold_bn(w, b, gamma, beta, mean, var, eps=1e-5):
    """Fold inference-mode BatchNorm into a 1x1 conv (w: (Cin, Cout), b: (Cout,))."""
    scale = gamma / jnp.sqrt(var + eps)
    w_eff = w * scale[None, :]
    b_eff = (b - mean) * scale + beta
    return w_eff, b_eff


def _pick_pixel_tile(hw, max_tile=32768):
    """Largest pixel tile that is either the full H*W or a 128-multiple divisor."""
    if hw <= max_tile:
        return hw
    t = (max_tile // 128) * 128
    while t >= 128:
        if hw % t == 0:
            return t
        t -= 128
    return hw  # fallback: single full-width block (still correct)


@jax.jit
def attention_block_pallas(g, x, params):
    """g: (N, F_g, H, W), x: (N, F_l, H, W)  ->  (N, F_l, H, W)  (NCHW, like PyTorch)."""
    N, F_g, H, W = g.shape
    _, F_l, _, _ = x.shape
    HW = H * W

    wg, bg = _fold_bn(params["wg"], params["bg"], params["bn_g_gamma"],
                      params["bn_g_beta"], params["bn_g_mean"], params["bn_g_var"])
    wx, bx = _fold_bn(params["wx"], params["bx"], params["bn_x_gamma"],
                      params["bn_x_beta"], params["bn_x_mean"], params["bn_x_var"])
    wp, bp = _fold_bn(params["wp"], params["bp"], params["bn_p_gamma"],
                      params["bn_p_beta"], params["bn_p_mean"], params["bn_p_var"])
    F_int = wg.shape[1]

    # Weights oriented as (out_channels, in_channels); biases as columns.
    wgT = wg.T.astype(jnp.float32)                           # (F_int, F_g)
    wxT = wx.T.astype(jnp.float32)                           # (F_int, F_l)
    bias = (bg + bx).reshape(F_int, 1).astype(jnp.float32)   # bg + bx fused
    wp2 = wp.reshape(F_int, 1).astype(jnp.float32)
    bp2 = bp.reshape(1, 1).astype(jnp.float32)

    # NCHW -> (N, C, H*W): pure reshape, no data movement / transpose.
    g3 = g.reshape(N, F_g, HW)
    x3 = x.reshape(N, F_l, HW)

    tp = _pick_pixel_tile(HW)
    grid = (N, HW // tp)

    out3 = pl.pallas_call(
        attention_kernel,
        out_shape=jax.ShapeDtypeStruct((N, F_l, HW), x.dtype),
        grid=grid,
        in_specs=[
            pl.BlockSpec((None, F_g, tp), lambda n, i: (n, 0, i)),
            pl.BlockSpec((None, F_l, tp), lambda n, i: (n, 0, i)),
            pl.BlockSpec((F_int, F_g), lambda n, i: (0, 0)),
            pl.BlockSpec((F_int, F_l), lambda n, i: (0, 0)),
            pl.BlockSpec((F_int, 1), lambda n, i: (0, 0)),
            pl.BlockSpec((F_int, 1), lambda n, i: (0, 0)),
            pl.BlockSpec((1, 1), lambda n, i: (0, 0)),
        ],
        out_specs=pl.BlockSpec((None, F_l, tp), lambda n, i: (n, 0, i)),
        compiler_params=pltpu.CompilerParams(
            dimension_semantics=("parallel", "parallel")),
    )(g3, x3, wgT, wxT, wp2, bias, bp2)

    return out3.reshape(N, F_l, H, W)


def attention_block_ref(g, x, params):
    """Pure-JAX reference (same inference-mode BN folding), NCHW throughout."""
    wg, bg = _fold_bn(params["wg"], params["bg"], params["bn_g_gamma"],
                      params["bn_g_beta"], params["bn_g_mean"], params["bn_g_var"])
    wx, bx = _fold_bn(params["wx"], params["bx"], params["bn_x_gamma"],
                      params["bn_x_beta"], params["bn_x_mean"], params["bn_x_var"])
    wp, bp = _fold_bn(params["wp"], params["bp"], params["bn_p_gamma"],
                      params["bn_p_beta"], params["bn_p_mean"], params["bn_p_var"])
    g1 = jnp.einsum("nchw,cd->ndhw", g, wg) + bg[None, :, None, None]
    x1 = jnp.einsum("nchw,cd->ndhw", x, wx) + bx[None, :, None, None]
    s = g1 + x1
    h = jnp.where(s > 0, s, 0.01 * s)
    psi = jax.nn.sigmoid(jnp.einsum("ndhw,do->nohw", h, wp) + bp[None, :, None, None])
    return x * psi


def make_params(key, F_g, F_l, F_int):
    ks = jax.random.split(key, 12)
    p = {
        # 1x1 conv weights stored as (Cin, Cout).
        "wg": jax.random.normal(ks[0], (F_g, F_int), jnp.float32) * 0.2,
        "bg": jax.random.normal(ks[1], (F_int,), jnp.float32) * 0.1,
        "wx": jax.random.normal(ks[2], (F_l, F_int), jnp.float32) * 0.2,
        "bx": jax.random.normal(ks[3], (F_int,), jnp.float32) * 0.1,
        "wp": jax.random.normal(ks[4], (F_int, 1), jnp.float32) * 0.2,
        "bp": jax.random.normal(ks[5], (1,), jnp.float32) * 0.1,
        # BatchNorm (inference-mode running stats; deterministic, non-identity).
        "bn_g_gamma": 1.0 + 0.1 * jax.random.normal(ks[6], (F_int,), jnp.float32),
        "bn_g_beta": 0.05 * jax.random.normal(ks[7], (F_int,), jnp.float32),
        "bn_g_mean": 0.1 * jax.random.normal(ks[8], (F_int,), jnp.float32),
        "bn_g_var": jnp.abs(1.0 + 0.1 * jax.random.normal(ks[9], (F_int,), jnp.float32)),
        "bn_x_gamma": 1.0 + 0.1 * jax.random.normal(ks[10], (F_int,), jnp.float32),
        "bn_x_beta": 0.05 * jax.random.normal(ks[11], (F_int,), jnp.float32),
        "bn_x_mean": jnp.zeros((F_int,), jnp.float32),
        "bn_x_var": jnp.ones((F_int,), jnp.float32),
        "bn_p_gamma": jnp.ones((1,), jnp.float32),
        "bn_p_beta": jnp.zeros((1,), jnp.float32),
        "bn_p_mean": jnp.zeros((1,), jnp.float32),
        "bn_p_var": jnp.ones((1,), jnp.float32),
    }
    return p


if __name__ == "__main__":
    # Small shapes consistent with the module: F_g = F_l = 4, F_int = 8.
    N, F_g, F_l, F_int, H, W = 2, 4, 4, 8, 16, 16

    key = jax.random.PRNGKey(0)
    kg, kx, kp = jax.random.split(key, 3)
    g = jax.random.normal(kg, (N, F_g, H, W), jnp.float32)
    x = jax.random.normal(kx, (N, F_l, H, W), jnp.float32)
    params = make_params(kp, F_g, F_l, F_int)

    out = attention_block_pallas(g, x, params)
    out = jax.block_until_ready(out)

    ref = attention_block_ref(g, x, params)
    assert out.shape == (N, F_l, H, W)
    assert jnp.allclose(out, ref, atol=1e-5, rtol=1e-5), "mismatch vs reference"

    print("KERNEL_OK")
</pallas_src>

<mosaic_0001>
module attributes {stable_mosaic.version = 11 : i64} {
  func.func @attention_kernel(%arg0: i32, %arg1: i32, %arg2: memref<1x4x256xf32, #tpu.memory_space<vmem>>, %arg3: memref<1x4x256xf32, #tpu.memory_space<vmem>>, %arg4: memref<8x4xf32, #tpu.memory_space<vmem>>, %arg5: memref<8x4xf32, #tpu.memory_space<vmem>>, %arg6: memref<8x1xf32, #tpu.memory_space<vmem>>, %arg7: memref<8x1xf32, #tpu.memory_space<vmem>>, %arg8: memref<1x1xf32, #tpu.memory_space<vmem>>, %arg9: memref<1x4x256xf32, #tpu.memory_space<vmem>>) attributes {dimension_semantics = [#tpu.dimension_semantics<parallel>, #tpu.dimension_semantics<parallel>], iteration_bounds = array<i64: 2, 1>, scalar_prefetch = 0 : i64, scratch_operands = 0 : i64, tpu.core_type = #tpu.core_type<tc>, window_params = [{transform_indices = @transform_0, window_bounds = array<i64: 1, 4, 256>}, {transform_indices = @transform_1, window_bounds = array<i64: 1, 4, 256>}, {pipeline_mode = #tpu.pipeline_mode<synchronous>, transform_indices = @transform_2, window_bounds = array<i64: 8, 4>}, {pipeline_mode = #tpu.pipeline_mode<synchronous>, transform_indices = @transform_3, window_bounds = array<i64: 8, 4>}, {pipeline_mode = #tpu.pipeline_mode<synchronous>, transform_indices = @transform_4, window_bounds = array<i64: 8, 1>}, {pipeline_mode = #tpu.pipeline_mode<synchronous>, transform_indices = @transform_5, window_bounds = array<i64: 8, 1>}, {pipeline_mode = #tpu.pipeline_mode<synchronous>, transform_indices = @transform_6, window_bounds = array<i64: 1, 1>}, {transform_indices = @transform_7, window_bounds = array<i64: 1, 4, 256>}]} {
    %c0 = arith.constant 0 : index
    %c0_0 = arith.constant 0 : index
    %c0_1 = arith.constant 0 : index
    %0 = vector.load %arg2[%c0, %c0_0, %c0_1] : memref<1x4x256xf32, #tpu.memory_space<vmem>>, vector<1x4x256xf32>
    %1 = vector.shape_cast %0 : vector<1x4x256xf32> to vector<4x256xf32>
    %c0_2 = arith.constant 0 : index
    %c0_3 = arith.constant 0 : index
    %c0_4 = arith.constant 0 : index
    %2 = vector.load %arg3[%c0_2, %c0_3, %c0_4] : memref<1x4x256xf32, #tpu.memory_space<vmem>>, vector<1x4x256xf32>
    %3 = vector.shape_cast %2 : vector<1x4x256xf32> to vector<4x256xf32>
    %c0_5 = arith.constant 0 : index
    %c0_6 = arith.constant 0 : index
    %4 = vector.load %arg4[%c0_5, %c0_6] : memref<8x4xf32, #tpu.memory_space<vmem>>, vector<8x4xf32>
    %c0_7 = arith.constant 0 : index
    %c0_8 = arith.constant 0 : index
    %5 = vector.load %arg5[%c0_7, %c0_8] : memref<8x4xf32, #tpu.memory_space<vmem>>, vector<8x4xf32>
    %6 = vector.extract_strided_slice %4 {offsets = [0, 0], sizes = [8, 1], strides = [1, 1]} : vector<8x4xf32> to vector<8x1xf32>
    %7 = vector.extract_strided_slice %1 {offsets = [0, 0], sizes = [1, 256], strides = [1, 1]} : vector<4x256xf32> to vector<1x256xf32>
    %8 = vector.broadcast %6 : vector<8x1xf32> to vector<8x256xf32>
    %9 = vector.broadcast %7 : vector<1x256xf32> to vector<8x256xf32>
    %10 = arith.mulf %8, %9 : vector<8x256xf32>
    %c0_9 = arith.constant 0 : index
    %c0_10 = arith.constant 0 : index
    %11 = vector.load %arg7[%c0_9, %c0_10] : memref<8x1xf32, #tpu.memory_space<vmem>>, vector<8x1xf32>
    %12 = vector.broadcast %11 : vector<8x1xf32> to vector<8x256xf32>
    %13 = arith.addf %10, %12 : vector<8x256xf32>
    %14 = vector.extract_strided_slice %4 {offsets = [0, 1], sizes = [8, 1], strides = [1, 1]} : vector<8x4xf32> to vector<8x1xf32>
    %15 = vector.extract_strided_slice %1 {offsets = [1, 0], sizes = [1, 256], strides = [1, 1]} : vector<4x256xf32> to vector<1x256xf32>
    %16 = vector.broadcast %14 : vector<8x1xf32> to vector<8x256xf32>
    %17 = vector.broadcast %15 : vector<1x256xf32> to vector<8x256xf32>
    %18 = arith.mulf %16, %17 : vector<8x256xf32>
    %19 = arith.addf %13, %18 : vector<8x256xf32>
    %20 = vector.extract_strided_slice %4 {offsets = [0, 2], sizes = [8, 1], strides = [1, 1]} : vector<8x4xf32> to vector<8x1xf32>
    %21 = vector.extract_strided_slice %1 {offsets = [2, 0], sizes = [1, 256], strides = [1, 1]} : vector<4x256xf32> to vector<1x256xf32>
    %22 = vector.broadcast %20 : vector<8x1xf32> to vector<8x256xf32>
    %23 = vector.broadcast %21 : vector<1x256xf32> to vector<8x256xf32>
    %24 = arith.mulf %22, %23 : vector<8x256xf32>
    %25 = arith.addf %19, %24 : vector<8x256xf32>
    %26 = vector.extract_strided_slice %4 {offsets = [0, 3], sizes = [8, 1], strides = [1, 1]} : vector<8x4xf32> to vector<8x1xf32>
    %27 = vector.extract_strided_slice %1 {offsets = [3, 0], sizes = [1, 256], strides = [1, 1]} : vector<4x256xf32> to vector<1x256xf32>
    %28 = vector.broadcast %26 : vector<8x1xf32> to vector<8x256xf32>
    %29 = vector.broadcast %27 : vector<1x256xf32> to vector<8x256xf32>
    %30 = arith.mulf %28, %29 : vector<8x256xf32>
    %31 = arith.addf %25, %30 : vector<8x256xf32>
    %32 = vector.extract_strided_slice %5 {offsets = [0, 0], sizes = [8, 1], strides = [1, 1]} : vector<8x4xf32> to vector<8x1xf32>
    %33 = vector.extract_strided_slice %3 {offsets = [0, 0], sizes = [1, 256], strides = [1, 1]} : vector<4x256xf32> to vector<1x256xf32>
    %34 = vector.broadcast %32 : vector<8x1xf32> to vector<8x256xf32>
    %35 = vector.broadcast %33 : vector<1x256xf32> to vector<8x256xf32>
    %36 = arith.mulf %34, %35 : vector<8x256xf32>
    %37 = arith.addf %31, %36 : vector<8x256xf32>
    %38 = vector.extract_strided_slice %5 {offsets = [0, 1], sizes = [8, 1], strides = [1, 1]} : vector<8x4xf32> to vector<8x1xf32>
    %39 = vector.extract_strided_slice %3 {offsets = [1, 0], sizes = [1, 256], strides = [1, 1]} : vector<4x256xf32> to vector<1x256xf32>
    %40 = vector.broadcast %38 : vector<8x1xf32> to vector<8x256xf32>
    %41 = vector.broadcast %39 : vector<1x256xf32> to vector<8x256xf32>
    %42 = arith.mulf %40, %41 : vector<8x256xf32>
    %43 = arith.addf %37, %42 : vector<8x256xf32>
    %44 = vector.extract_strided_slice %5 {offsets = [0, 2], sizes = [8, 1], strides = [1, 1]} : vector<8x4xf32> to vector<8x1xf32>
    %45 = vector.extract_strided_slice %3 {offsets = [2, 0], sizes = [1, 256], strides = [1, 1]} : vector<4x256xf32> to vector<1x256xf32>
    %46 = vector.broadcast %44 : vector<8x1xf32> to vector<8x256xf32>
    %47 = vector.broadcast %45 : vector<1x256xf32> to vector<8x256xf32>
    %48 = arith.mulf %46, %47 : vector<8x256xf32>
    %49 = arith.addf %43, %48 : vector<8x256xf32>
    %50 = vector.extract_strided_slice %5 {offsets = [0, 3], sizes = [8, 1], strides = [1, 1]} : vector<8x4xf32> to vector<8x1xf32>
    %51 = vector.extract_strided_slice %3 {offsets = [3, 0], sizes = [1, 256], strides = [1, 1]} : vector<4x256xf32> to vector<1x256xf32>
    %52 = vector.broadcast %50 : vector<8x1xf32> to vector<8x256xf32>
    %53 = vector.broadcast %51 : vector<1x256xf32> to vector<8x256xf32>
    %54 = arith.mulf %52, %53 : vector<8x256xf32>
    %55 = arith.addf %49, %54 : vector<8x256xf32>
    %cst = arith.constant 0.000000e+00 : f32
    %56 = vector.broadcast %cst : f32 to vector<8x256xf32>
    %57 = arith.cmpf ogt, %55, %56 : vector<8x256xf32>
    %cst_11 = arith.constant 0.00999999977 : f32
    %58 = vector.broadcast %cst_11 : f32 to vector<8x256xf32>
    %59 = arith.mulf %58, %55 : vector<8x256xf32>
    %60 = arith.select %57, %55, %59 : vector<8x256xi1>, vector<8x256xf32>
    %c0_12 = arith.constant 0 : index
    %c0_13 = arith.constant 0 : index
    %61 = vector.load %arg6[%c0_12, %c0_13] : memref<8x1xf32, #tpu.memory_space<vmem>>, vector<8x1xf32>
    %62 = vector.broadcast %61 : vector<8x1xf32> to vector<8x256xf32>
    %63 = arith.mulf %60, %62 : vector<8x256xf32>
    %cst_14 = arith.constant dense<0.000000e+00> : vector<256xf32>
    %64 = vector.multi_reduction <add>, %63, %cst_14 [0] : vector<8x256xf32> to vector<256xf32>
    %65 = vector.shape_cast %64 : vector<256xf32> to vector<1x256xf32>
    %c0_15 = arith.constant 0 : index
    %c0_16 = arith.constant 0 : index
    %66 = vector.load %arg8[%c0_15, %c0_16] : memref<1x1xf32, #tpu.memory_space<vmem>>, vector<1x1xf32>
    %67 = vector.broadcast %66 : vector<1x1xf32> to vector<1x256xf32>
    %68 = arith.addf %65, %67 : vector<1x256xf32>
    %69 = arith.negf %68 : vector<1x256xf32>
    %70 = math.exp %69 : vector<1x256xf32>
    %cst_17 = arith.constant 1.000000e+00 : f32
    %71 = vector.broadcast %cst_17 : f32 to vector<1x256xf32>
    %72 = arith.addf %71, %70 : vector<1x256xf32>
    %73 = arith.divf %71, %72 : vector<1x256xf32>
    %74 = vector.broadcast %73 : vector<1x256xf32> to vector<4x256xf32>
    %75 = arith.mulf %3, %74 : vector<4x256xf32>
    %c0_18 = arith.constant 0 : index
    %c0_19 = arith.constant 0 : index
    %c0_20 = arith.constant 0 : index
    %76 = vector.load %arg9[%c0_18, %c0_19, %c0_20] : memref<1x4x256xf32, #tpu.memory_space<vmem>>, vector<1x4x256xf32>
    %77 = vector.shape_cast %76 : vector<1x4x256xf32> to vector<4x256xf32>
    %78 = vector.shape_cast %75 : vector<4x256xf32> to vector<1x4x256xf32>
    tpu.vector_store %arg9[%c0_18, %c0_19, %c0_20], %78 {strides = array<i32>} : memref<1x4x256xf32, #tpu.memory_space<vmem>>, vector<1x4x256xf32>,
    return
  }
  func.func @transform_0(%arg0: i32, %arg1: i32) -> (i32, i32, i32) {
    %c0_i32 = arith.constant 0 : i32
    %c0_i32_0 = arith.constant 0 : i32
    return %arg0, %c0_i32, %arg1 : i32, i32, i32
  }
  func.func @transform_1(%arg0: i32, %arg1: i32) -> (i32, i32, i32) {
    %c0_i32 = arith.constant 0 : i32
    %c0_i32_0 = arith.constant 0 : i32
    return %arg0, %c0_i32, %arg1 : i32, i32, i32
  }
  func.func @transform_2(%arg0: i32, %arg1: i32) -> (i32, i32) {
    %c0_i32 = arith.constant 0 : i32
    %c0_i32_0 = arith.constant 0 : i32
    %c0_i32_1 = arith.constant 0 : i32
    return %c0_i32, %c0_i32_0 : i32, i32
  }
  func.func @transform_3(%arg0: i32, %arg1: i32) -> (i32, i32) {
    %c0_i32 = arith.constant 0 : i32
    %c0_i32_0 = arith.constant 0 : i32
    %c0_i32_1 = arith.constant 0 : i32
    return %c0_i32, %c0_i32_0 : i32, i32
  }
  func.func @transform_4(%arg0: i32, %arg1: i32) -> (i32, i32) {
    %c0_i32 = arith.constant 0 : i32
    %c0_i32_0 = arith.constant 0 : i32
    %c0_i32_1 = arith.constant 0 : i32
    return %c0_i32, %c0_i32_0 : i32, i32
  }
  func.func @transform_5(%arg0: i32, %arg1: i32) -> (i32, i32) {
    %c0_i32 = arith.constant 0 : i32
    %c0_i32_0 = arith.constant 0 : i32
    %c0_i32_1 = arith.constant 0 : i32
    return %c0_i32, %c0_i32_0 : i32, i32
  }
  func.func @transform_6(%arg0: i32, %arg1: i32) -> (i32, i32) {
    %c0_i32 = arith.constant 0 : i32
    %c0_i32_0 = arith.constant 0 : i32
    %c0_i32_1 = arith.constant 0 : i32
    return %c0_i32, %c0_i32_0 : i32, i32
  }
  func.func @transform_7(%arg0: i32, %arg1: i32) -> (i32, i32, i32) {
    %c0_i32 = arith.constant 0 : i32
    %c0_i32_0 = arith.constant 0 : i32
    return %arg0, %c0_i32, %arg1 : i32, i32, i32
  }
}

</mosaic_0001>

<bundles_post_ra>
// kernel: attention_block_pallas.1
= control target key start
LH: loop header
LB: loop body
LE: loop exit
PB: predicated region body
PF: predicated region fallthrough
CT: control target
= control target key end

     0   :  { %s874_s26 = smov 0   ;;  %s876_s27 = smov 0   ;;  %s985_s0 = inlined_call_operand.vmem [shape: f32[2,4,256], index: 0, kind: input, shape index: {}]   ;;  %s986_s1 = inlined_call_operand.vmem [shape: f32[2,4,256], index: 1, kind: input, shape index: {}]   ;;  %s987_s2 = inlined_call_operand.vmem [shape: f32[8,4], index: 2, kind: input, shape index: {}]   ;;  %s988_s3 = inlined_call_operand.vmem [shape: f32[8,4], index: 3, kind: input, shape index: {}]   ;;  %s989_s4 = inlined_call_operand.vmem [shape: f32[8,1], index: 4, kind: input, shape index: {}]   ;;  %s990_s5 = inlined_call_operand.vmem [shape: f32[8,1], index: 5, kind: input, shape index: {}]   ;;  %s991_s6 = inlined_call_operand.<no memory space> [shape: f32[1,1], index: 6, kind: input, shape index: {}]   ;;  %s992_s7 = inlined_call_operand.vmem [shape: f32[2,4,256], index: 7, kind: output, shape index: {}]  }
   0x1   :  { %v12_v0 = vstv %s991_s6  ;;  %s878_s28 = smov 0  }
   0x2   :  { %13 = vst [vmem:[#allocation2] sm:$0x1] %v12_v0 }
   0x3 LB: > { %s31_s6 = sadd.s32 1, %s821_s27  ;;  %p743_p0 = scmp.ge.s32.totalorder %s825_s28, 1  ;;  %s825_s28 = sphi %s878_s28, %s19_s28   ;;  %s821_s27 = sphi %s876_s27, %s994_s27   ;;  %s817_s26 = sphi %s874_s26, %s993_s26  }
   0x4   : > { %p33_p1 = scmp.ge.s32.totalorder %s31_s6, 2  ;;  %p277_p2 = scmp.lt.s32.totalorder %s825_s28, 3 }
   0x6   : > { %s996_s6 = smov (%p33_p1, %s31_s6), 0  ;;  %p278_p3 = pnand %p743_p0, %p277_p2 }
   0x7   : > { %v358_v1 = vld [vmem:[%s987_s2] sm:$0xff] (!%p278_p3)  ;;  %v827_v2 = vmov (!%p278_p3), 1   ;;  %v828_v3 = vmov (!%p278_p3), 0   ;;  %v829_v5 = vmov (!%p278_p3), 2   ;;  %v830_v7 = vmov (!%p278_p3), 3   ;;  %p327_p4 = scmp.lt.s32.totalorder (!%p278_p3), %s817_s26, 1 }
   0x8   : > { %281 = sbr.rel (%p278_p3) target bundleno = 212 (0xd4), region = 48  ;;  %786 = vset.pattern.permute.xlu1 (!%p278_p3), %v827_v2  ;;  %785 = vset.pattern.permute.xlu0 (!%p278_p3), %v828_v3  ;;  %v386_v4 = vld [vmem:[%s990_s5] sm:$0xff] (!%p278_p3)  ;;  %v366_v10 = vlaneseq (!%p278_p3) }
   0x9   : > { %395 = vperm.xlu1 (!%p278_p3), %786, %v358_v1   ;;  %362 = vperm.xlu0 (!%p278_p3), %785, %v358_v1   ;;  %v359_v6 = vld [vmem:[%s988_s3] sm:$0xff] (!%p278_p3) }
   0xa   : > { %v604_v8 = vld [vmem:[#allocation2] sm:$0x1] (!%p278_p3)  ;;  %v910_v11 = vshrl.u32 (!%p278_p3), %v366_v10, 7 }
   0xb   : > { %v584_v9 = vld [vmem:[%s989_s4] sm:$0xff] (!%p278_p3) }
   0xc   : > { %v917_v12 = vsub.s32 (!%p278_p3), 0, %v910_v11  ;;  %v372_v13 = vsub.s32 (!%p278_p3), 4, %v910_v11  ;;  %v921_v15 = vsub.s32 (!%p278_p3), 1, %v910_v11  ;;  %v404_v16 = vsub.s32 (!%p278_p3), 5, %v910_v11 }
   0xd   : > { %787 = vset.pattern.permute.xlu1 (!%p278_p3), %v829_v5  ;;  %389 = vperm.xlu0 (!%p278_p3), %785, %v386_v4   ;;  %v926_v19 = vsub.s32 (!%p278_p3), 2, %v910_v11  ;;  %v430_v20 = vsub.s32 (!%p278_p3), 6, %v910_v11  ;;  %v930_v21 = vsub.s32 (!%p278_p3), 3, %v910_v11  ;;  %v456_v22 = vsub.s32 (!%p278_p3), 7, %v910_v11 }
   0xe   : > { %421 = vperm.xlu1 (!%p278_p3), %787, %v358_v1  }
   0xf   : > { %s998_s26 = smov (!%p327_p4, %s817_s26), 1 }
  0x10   : > { %s908_s14 = sshll.u32 %s998_s26, 3 }
  0x11   : > { %788 = vset.pattern.permute.xlu0 %v830_v7  ;;  %s334_s17 = scalar_lea.vmem %s985_s0, %s908_s14  ;;  %s344_s20 = scalar_lea.vmem %s986_s1, %s908_s14 }
  0x12   : > { %789 = vset.pattern.permute.xlu1 %v828_v3  ;;  %447 = vperm.xlu0 %788, %v358_v1   ;;  %v356_v14 = vld [vmem:[%s334_s17] sm:$0xff]  ;;  %s354_s23 = scalar_lea.vmem %s992_s7, %s908_s14 }
  0x13   : > { %474 = vperm.xlu1 %789, %v359_v6   ;;  %v369_v17 = vrot.slane %v356_v14, %v917_v12  ;;  %v373_v18 = vrot.slane %v356_v14, %v372_v13  ;;  %v401_v23 = vrot.slane %v356_v14, %v921_v15  ;;  %v405_v24 = vrot.slane %v356_v14, %v404_v16  ;;  %v942_v33 = vld [vmem:[%s344_s20] sm:$0xff] }
  0x14   : > { %v427_v27 = vrot.slane %v356_v14, %v926_v19  ;;  %v431_v28 = vrot.slane %v356_v14, %v430_v20  ;;  %v453_v31 = vrot.slane %v356_v14, %v930_v21  ;;  %v457_v32 = vrot.slane %v356_v14, %v456_v22 }
  0x15   : > { %v379_v25 = vrot.slane %v369_v17, %v917_v12  ;;  %v383_v26 = vrot.slane %v373_v18, %v917_v12  ;;  %v411_v34 = vrot.slane %v401_v23, %v921_v15  ;;  %v415_v35 = vrot.slane %v405_v24, %v921_v15 }
  0x16   : > { %791 = vset.pattern.permute.xlu0 %v829_v5  ;;  %v437_v38 = vrot.slane %v427_v27, %v926_v19  ;;  %v441_v39 = vrot.slane %v431_v28, %v926_v19  ;;  %v481_v40 = vrot.slane %v942_v33, %v917_v12  ;;  %v485_v41 = vrot.slane %v942_v33, %v372_v13 }
  0x17   : > { %790 = vset.pattern.permute.xlu1 %v827_v2  ;;  %527 = vperm.xlu0 %791, %v359_v6   ;;  %v463_v43 = vrot.slane %v453_v31, %v930_v21  ;;  %v467_v44 = vrot.slane %v457_v32, %v930_v21  ;;  %v507_v52 = vrot.slane %v942_v33, %v921_v15 }
  0x18   : > { %501 = vperm.xlu1 %790, %v359_v6   ;;  %v511_v53 = vrot.slane %v942_v33, %v404_v16  ;;  %v491_v56 = vrot.slane %v481_v40, %v917_v12  ;;  %v495_v57 = vrot.slane %v485_v41, %v917_v12  ;;  %v533_v58 = vrot.slane %v942_v33, %v926_v19 }
  0x19   : > { %v537_v59 = vrot.slane %v942_v33, %v430_v20  ;;  %v517_v4 = vrot.slane %v507_v52, %v921_v15  ;;  %v559_v10 = vrot.slane %v942_v33, %v930_v21  ;;  %v563_v11 = vrot.slane %v942_v33, %v456_v22 }
  0x1a   : > { %v521_v5 = vrot.slane %v511_v53, %v921_v15 }
  0x1b   : > { %794 = vset.pattern.permute.xlu0 %v828_v3  ;;  %v569_v15 = vrot.slane %v559_v10, %v930_v21 }
  0x1c   : > { %792 = vset.pattern.permute.xlu1 %v830_v7  ;;  %607 = vperm.xlu0 %794, %v604_v8   ;;  %v543_v8 = vrot.slane %v533_v58, %v926_v19 }
  0x1d   : > { %553 = vperm.xlu1 %792, %v359_v6  }
  0x21   : > { %793 = vset.pattern.permute.xlu1 %v828_v3 }
  0x22   : > { %587 = vperm.xlu1 %793, %v584_v9   ;;  %v547_v9 = vrot.slane %v537_v59, %v926_v19 }
  0x88   : > { %v396_v29 = vpop.permute.xlu1 %395  ;;  %v363_v30 = vpop.permute.xlu0 %362 }
  0x89   : > { %v384_v36 = vmul.f32 %v379_v25, %v363_v30  ;;  %v385_v37 = vmul.f32 %v383_v26, %v363_v30  ;;  %v416_v45 = vmul.f32 %v411_v34, %v396_v29  ;;  %v417_v46 = vmul.f32 %v415_v35, %v396_v29 }
  0x8a   : > { %v573_v25 = vrot.slane %v563_v11, %v930_v21 }
  0x8c   : > { %v390_v42 = vpop.permute.xlu0 %389 }
  0x8d   : > { %v392_v47 = vadd.f32 %v390_v42, %v384_v36  ;;  %v393_v48 = vadd.f32 %v390_v42, %v385_v37  ;;  %v422_v49 = vpop.permute.xlu1 %421 }
  0x8e   : > { %v442_v50 = vmul.f32 %v437_v38, %v422_v49  ;;  %v443_v51 = vmul.f32 %v441_v39, %v422_v49 }
  0x8f   : > { %v418_v54 = vadd.f32 %v416_v45, %v392_v47  ;;  %v419_v55 = vadd.f32 %v417_v46, %v393_v48 }
  0x91   : > { %v444_v60 = vadd.f32 %v442_v50, %v418_v54  ;;  %v445_v61 = vadd.f32 %v443_v51, %v419_v55  ;;  %v448_v62 = vpop.permute.xlu0 %447 }
  0x92   : > { %v468_v63 = vmul.f32 %v463_v43, %v448_v62  ;;  %v469_v0 = vmul.f32 %v467_v44, %v448_v62  ;;  %v475_v1 = vpop.permute.xlu1 %474 }
  0x93   : > { %v496_v2 = vmul.f32 %v491_v56, %v475_v1  ;;  %v497_v3 = vmul.f32 %v495_v57, %v475_v1 }
  0x94   : > { %v470_v6 = vadd.f32 %v468_v63, %v444_v60  ;;  %v471_v7 = vadd.f32 %v469_v0, %v445_v61 }
  0x96   : > { %v528_v13 = vpop.permute.xlu0 %527  ;;  %v498_v14 = vadd.f32 %v496_v2, %v470_v6  ;;  %v499_v16 = vadd.f32 %v497_v3, %v471_v7 }
  0x97   : > { %v502_v17 = vpop.permute.xlu1 %501  ;;  %v548_v23 = vmul.f32 %v543_v8, %v528_v13  ;;  %v549_v24 = vmul.f32 %v547_v9, %v528_v13 }
  0x98   : > { %v522_v18 = vmul.f32 %v517_v4, %v502_v17  ;;  %v523_v20 = vmul.f32 %v521_v5, %v502_v17 }
  0x9a   : > { %v524_v26 = vadd.f32 %v522_v18, %v498_v14  ;;  %v525_v27 = vadd.f32 %v523_v20, %v499_v16 }
  0x9b   : > { %v608_v46 = vpop.permute.xlu0 %607 }
  0x9c   : > { %v550_v19 = vadd.f32 %v548_v23, %v524_v26  ;;  %v551_v28 = vadd.f32 %v549_v24, %v525_v27  ;;  %v554_v29 = vpop.permute.xlu1 %553  ;;  %v613_v51 = vrot.slane %v608_v46, %v917_v12 }
  0x9d   : > { %v574_v30 = vmul.f32 %v569_v15, %v554_v29  ;;  %v575_v31 = vmul.f32 %v573_v25, %v554_v29 }
  0x9f   : > { %v576_v22 = vadd.f32 %v574_v30, %v550_v19  ;;  %v577_v32 = vadd.f32 %v575_v31, %v551_v28 }
  0xa1   : > { %v588_v34 = vpop.permute.xlu1 %587  ;;  %vm578_vm0 = vcmp.gt.f32.partialorder %v576_v22, 0.0  ;;  %vm579_vm1 = vcmp.gt.f32.partialorder %v577_v32, 0.0  ;;  %v580_v35 = vmul.f32 0.01, %v576_v22  ;;  %v581_v36 = vmul.f32 0.01, %v577_v32 }
  0xa3   : > { %v582_v37 = vsel %vm578_vm0, %v576_v22, %v580_v35  ;;  %v583_v38 = vsel %vm579_vm1, %v577_v32, %v581_v36 }
  0xa4   : > { %v590_v39 = vmul.f32 %v588_v34, %v582_v37  ;;  %v591_v40 = vmul.f32 %v588_v34, %v583_v38 }
  0xa6   : > { %v592_v41 = vrot.slane %v590_v39, 4  ;;  %v598_v21 = vrot.slane %v591_v40, 4 }
  0xa8   : > { %v593_v42 = vadd.f32 %v592_v41, %v590_v39  ;;  %v599_v43 = vadd.f32 %v598_v21, %v591_v40 }
  0xaa   : > { %v594_v44 = vrot.slane %v593_v42, 2  ;;  %v600_v45 = vrot.slane %v599_v43, 2 }
  0xac   : > { %v595_v47 = vadd.f32 %v594_v44, %v593_v42  ;;  %v601_v48 = vadd.f32 %v600_v45, %v599_v43 }
  0xae   : > { %v596_v49 = vrot.slane %v595_v47, 1  ;;  %v602_v50 = vrot.slane %v601_v48, 1 }
  0xb0   : > { %v597_v52 = vadd.f32 %v596_v49, %v595_v47  ;;  %v603_v53 = vadd.f32 %v602_v50, %v601_v48 }
  0xb2   : > { %v614_v54 = vadd.f32 %v613_v51, %v597_v52  ;;  %v615_v55 = vadd.f32 %v613_v51, %v603_v53 }
  0xb4   : > { %v750_v56 = vmul.f32 -1.442695, %v614_v54  ;;  %v751_v57 = vmul.f32 -1.442695, %v615_v55 }
  0xb6   : > { %795 = vpow2.f32 %v750_v56 }
  0xb7   : > { %797 = vpow2.f32 %v751_v57 }
  0xc0   : > { %v796_v58 = vpop.eup %795 }
  0xc1   : > { %v798_v59 = vpop.eup %797  ;;  %v622_v60 = vadd.f32 1.0, %v796_v58 }
  0xc2   : > { %v623_v61 = vadd.f32 1.0, %v798_v59 }
  0xc3   : > { %799 = vrcp.f32 %v622_v60 }
  0xc4   : > { %801 = vrcp.f32 %v623_v61 }
  0xcd   : > { %v800_v62 = vpop.eup %799 }
  0xce   : > { %v802_v63 = vpop.eup %801 }
  0xcf   : > { %v630_v0 = vcombine.low %v800_v62, %v802_v63 }
  0xd1   : > { %v632_v12 = vmul.f32 %v630_v0, %v942_v33 }
  0xd3   : > { %633 = vst [vmem:[%s354_s23] sm:$0xff] %v632_v12 }
  0xd4 PF: > { %s19_s28 = sadd.s32 1, %s825_s28   ;;  %s993_s26 = smov %s821_s27 }
  0xd5   : > { %p16_p5 = scmp.ge.s32.totalorder %s19_s28, 4   ;;  %s994_s27 = smov %s996_s6 }
  0xd7   :  { %18 = sbr.rel (!%p16_p5) target bundleno = 3 (0x3), region = 81 }

</bundles_post_ra>
